<compile_context>
chip_gen: v5e
topology: v5e:2x2
jax: 0.10.0
libtpu: 0.0.40
codegen_flags: <defaults>
</compile_context>

<pallas_src>
import jax
import jax.numpy as jnp
from jax import lax
from jax.experimental import pallas as pl
from jax.experimental.pallas import tpu as pltpu

# ---------------------------------------------------------------------------
# Problem sizes (small but structurally identical to the PyTorch module).
# ---------------------------------------------------------------------------
L = 512            # Linear in/out feature length (module default: 5000)
S1 = 128           # step1
S2 = 64            # step2
S3 = 20            # step3
NDEC = 7           # number of decoders
N = 8              # batch of signals (ndim == 2 input path)
TL = 512           # lane tile of the decoder output dim (== L for the test)
assert L % TL == 0 and TL % 128 == 0
NJ = L // TL       # output tiles per decoder

ENC_B_SLOT = 128   # lane-aligned slots inside the packed encoder-bias row
DEC_B_SLOT = 128   # lane-aligned slots inside the packed decoder-bias buffer


# ---------------------------------------------------------------------------
# Kernel 1: encoder (runs once, everything resident).
# ---------------------------------------------------------------------------
def _encoder_kernel(x_ref, we1_ref, we2_ref, we3_ref, be_ref, z_ref):
    relu = lambda v: jnp.maximum(v, 0.0)
    b1 = be_ref[:, 0:S1]
    b2 = be_ref[:, ENC_B_SLOT:ENC_B_SLOT + S2]
    b3 = be_ref[:, 2 * ENC_B_SLOT:2 * ENC_B_SLOT + S3]
    h = relu(jnp.dot(x_ref[...], we1_ref[...],
                     preferred_element_type=jnp.float32) + b1)        # (N, S1)
    h = relu(jnp.dot(h, we2_ref[...],
                     preferred_element_type=jnp.float32) + b2)        # (N, S2)
    z_ref[...] = relu(jnp.dot(h, we3_ref[...],
                              preferred_element_type=jnp.float32) + b3)  # (N, S3)


# ---------------------------------------------------------------------------
# Kernel 2: decoders.  grid = (decoder d, output tile j).
# ---------------------------------------------------------------------------
def _decoder_kernel(z_ref, wd1_ref, wd2_ref, bd12_ref, wd3_ref, bd3_ref,
                    out_ref, u_ref):
    relu = lambda v: jnp.maximum(v, 0.0)

    # Decoder-d hidden stack: computed once per decoder (first output tile),
    # carried across the tile axis in VMEM scratch (j axis is "arbitrary").
    @pl.when(pl.program_id(1) == 0)
    def _():
        bd1 = bd12_ref[0, :, 0:S2]
        bd2 = bd12_ref[0, :, DEC_B_SLOT:DEC_B_SLOT + S1]
        u = relu(jnp.dot(z_ref[...], wd1_ref[0],
                         preferred_element_type=jnp.float32) + bd1)   # (N, S2)
        u = relu(jnp.dot(u, wd2_ref[0],
                         preferred_element_type=jnp.float32) + bd2)   # (N, S1)
        u_ref[...] = u

    # Per-decoder output bias slice for this tile (resident, no per-step DMA).
    if NJ == 1:
        bias = bd3_ref[0]                                             # (1, TL)
    else:
        off = pl.multiple_of(pl.program_id(1) * TL, 128)
        bias = bd3_ref[0, :, pl.ds(off, TL)]                          # (1, TL)

    # Streamed output tile: (N, S1) @ (S1, TL) on the MXU (bf16 weights,
    # f32 accumulation), lane-dense store directly in the final layout.
    y = jnp.dot(u_ref[...].astype(jnp.bfloat16), wd3_ref[0],
                preferred_element_type=jnp.float32) + bias            # (N, TL)
    out_ref[...] = y


# ---------------------------------------------------------------------------
# Wrapper: parameter packing / transposes, the two pallas_calls, free reshape.
# ---------------------------------------------------------------------------
def ecg_stacked_ae_forward(x, params):
    """x: (N, L) float32 — the nn.Linear(L, step1) ndim == 2 input path."""
    n = x.shape[0]
    f32 = jnp.float32

    # Packed, lane-aligned encoder biases: [be1 | be2 | be3] in 128-lane slots.
    be = jnp.zeros((1, 3 * ENC_B_SLOT), f32)
    be = be.at[0, 0:S1].set(params["be1"])
    be = be.at[0, ENC_B_SLOT:ENC_B_SLOT + S2].set(params["be2"])
    be = be.at[0, 2 * ENC_B_SLOT:2 * ENC_B_SLOT + S3].set(params["be3"])

    # Packed, lane-aligned decoder layer-1/2 biases: [bd1 | bd2] per decoder.
    bd12 = jnp.zeros((NDEC, 1, 2 * DEC_B_SLOT), f32)
    bd12 = bd12.at[:, 0, 0:S2].set(params["bD1"])
    bd12 = bd12.at[:, 0, DEC_B_SLOT:DEC_B_SLOT + S1].set(params["bD2"])

    # ---- Encoder: one small single-step kernel (PyTorch W is (out, in)). ----
    z = pl.pallas_call(
        _encoder_kernel,
        out_shape=jax.ShapeDtypeStruct((n, S3), f32),
        grid_spec=pltpu.PrefetchScalarGridSpec(
            num_scalar_prefetch=0,
            grid=(1,),
            in_specs=[
                pl.BlockSpec((n, L), lambda i: (0, 0)),            # x
                pl.BlockSpec((L, S1), lambda i: (0, 0)),           # We1^T
                pl.BlockSpec((S1, S2), lambda i: (0, 0)),          # We2^T
                pl.BlockSpec((S2, S3), lambda i: (0, 0)),          # We3^T
                pl.BlockSpec((1, 3 * ENC_B_SLOT), lambda i: (0, 0)),
            ],
            out_specs=pl.BlockSpec((n, S3), lambda i: (0, 0))),
    )(x.astype(f32), params["We1"].T, params["We2"].T, params["We3"].T, be)

    # ---- Decoders: stream WD3^T in bf16, write output in final layout. ----
    wd3t_bf16 = jnp.transpose(params["WD3"], (0, 2, 1)).astype(jnp.bfloat16)
    args = (
        z,                                           # (N, S3)
        jnp.transpose(params["WD1"], (0, 2, 1)),     # (7, S3, S2)
        jnp.transpose(params["WD2"], (0, 2, 1)),     # (7, S2, S1)
        bd12,                                        # (7, 1, 256)
        wd3t_bf16,                                   # (7, S1, L)  <- the big one
        params["bD3"].reshape(NDEC, 1, L),           # (7, 1, L)
    )
    in_specs = [
        pl.BlockSpec((n, S3), lambda d, j: (0, 0)),                  # z
        pl.BlockSpec((1, S3, S2), lambda d, j: (d, 0, 0)),           # WD1^T[d]
        pl.BlockSpec((1, S2, S1), lambda d, j: (d, 0, 0)),           # WD2^T[d]
        pl.BlockSpec((1, 1, 2 * DEC_B_SLOT), lambda d, j: (d, 0, 0)),
        pl.BlockSpec((1, S1, TL), lambda d, j: (d, 0, j)),           # streamed W
        pl.BlockSpec((1, 1, L), lambda d, j: (d, 0, 0)),             # bD3[d]
    ]
    # Output is written directly in final layout: block (N, TL) at column
    # block d * NJ + j of the (N, NDEC*L) slab.
    out_spec = pl.BlockSpec((n, TL), lambda d, j: (0, d * NJ + j))

    flat = pl.pallas_call(
        _decoder_kernel,
        out_shape=jax.ShapeDtypeStruct((n, NDEC * L), f32),
        grid_spec=pltpu.PrefetchScalarGridSpec(
            num_scalar_prefetch=0,
            grid=(NDEC, NJ),
            in_specs=in_specs,
            out_specs=out_spec,
            scratch_shapes=[pltpu.VMEM((n, S1), f32)]),
        compiler_params=pltpu.CompilerParams(
            dimension_semantics=("parallel", "arbitrary")),
    )(*args)

    # torch.stack -> (7, N, L); ndim == 2 path: permute(1, 0, 2) -> (N, 7, L),
    # squeeze() is a no-op for N > 1.  The kernel already wrote this layout,
    # so this reshape is free (no HBM transpose).
    return flat.reshape(n, NDEC, L)


# ---------------------------------------------------------------------------
# Deterministic parameter init (PyTorch-style U(-1/sqrt(fan_in), 1/sqrt(fan_in))).
# ---------------------------------------------------------------------------
def init_params(key):
    ks = jax.random.split(key, 12)

    def u(k, shape, fan_in):
        bound = 1.0 / float(fan_in) ** 0.5
        return jax.random.uniform(k, shape, jnp.float32, -bound, bound)

    return {
        # Encoder.
        "We1": u(ks[0], (S1, L), L),    "be1": u(ks[1], (S1,), L),
        "We2": u(ks[2], (S2, S1), S1),  "be2": u(ks[3], (S2,), S1),
        "We3": u(ks[4], (S3, S2), S2),  "be3": u(ks[5], (S3,), S2),
        # 7 independent decoders, PyTorch (out, in) layout, stacked on axis 0.
        "WD1": u(ks[6], (NDEC, S2, S3), S3), "bD1": u(ks[7], (NDEC, S2), S3),
        "WD2": u(ks[8], (NDEC, S1, S2), S2), "bD2": u(ks[9], (NDEC, S1), S2),
        "WD3": u(ks[10], (NDEC, L, S1), S1), "bD3": u(ks[11], (NDEC, L), S1),
    }


# ---------------------------------------------------------------------------
# Pure-JAX reference (mirrors the PyTorch forward) for a sanity check.
# ---------------------------------------------------------------------------
def reference_forward(x, p):
    relu = lambda v: jnp.maximum(v, 0.0)

    def lin(h, W, b):
        return jnp.dot(h, W.T, precision=lax.Precision.HIGHEST) + b

    z = relu(lin(x, p["We1"], p["be1"]))
    z = relu(lin(z, p["We2"], p["be2"]))
    z = relu(lin(z, p["We3"], p["be3"]))

    ys = []
    for d in range(NDEC):
        u_ = relu(lin(z, p["WD1"][d], p["bD1"][d]))
        u_ = relu(lin(u_, p["WD2"][d], p["bD2"][d]))
        ys.append(lin(u_, p["WD3"][d], p["bD3"][d]))

    stacked = jnp.stack(ys)                            # (7, N, L)
    return jnp.squeeze(jnp.transpose(stacked, (1, 0, 2)))


if __name__ == "__main__":
    root = jax.random.PRNGKey(0)
    k_param, k_x = jax.random.split(root)

    params = init_params(k_param)
    x = jax.random.normal(k_x, (N, L), jnp.float32)    # (batch, features) input

    out = jax.jit(ecg_stacked_ae_forward)(x, params)
    out = jax.block_until_ready(out)

    assert out.shape == (N, NDEC, L) and out.dtype == jnp.float32

    ref = reference_forward(x, params)
    if not jnp.allclose(out, ref, rtol=1e-2, atol=1e-2):
        err = float(jnp.max(jnp.abs(out - ref)))
        raise AssertionError(
            f"Pallas kernel output does not match JAX reference (max abs err {err})")

    print("KERNEL_OK")
</pallas_src>

<mosaic_0001>
module attributes {stable_mosaic.version = 11 : i64} {
  func.func @_encoder_kernel(%arg0: i32, %arg1: memref<8x512xf32, #tpu.memory_space<vmem>>, %arg2: memref<512x128xf32, #tpu.memory_space<vmem>>, %arg3: memref<128x64xf32, #tpu.memory_space<vmem>>, %arg4: memref<64x20xf32, #tpu.memory_space<vmem>>, %arg5: memref<1x384xf32, #tpu.memory_space<vmem>>, %arg6: memref<8x20xf32, #tpu.memory_space<vmem>>) attributes {dimension_semantics = [#tpu.dimension_semantics<arbitrary>], iteration_bounds = array<i64: 1>, scalar_prefetch = 0 : i64, scratch_operands = 0 : i64, tpu.core_type = #tpu.core_type<tc>, window_params = [{pipeline_mode = #tpu.pipeline_mode<synchronous>, transform_indices = @transform_0, window_bounds = array<i64: 8, 512>}, {pipeline_mode = #tpu.pipeline_mode<synchronous>, transform_indices = @transform_1, window_bounds = array<i64: 512, 128>}, {pipeline_mode = #tpu.pipeline_mode<synchronous>, transform_indices = @transform_2, window_bounds = array<i64: 128, 64>}, {pipeline_mode = #tpu.pipeline_mode<synchronous>, transform_indices = @transform_3, window_bounds = array<i64: 64, 20>}, {pipeline_mode = #tpu.pipeline_mode<synchronous>, transform_indices = @transform_4, window_bounds = array<i64: 1, 384>}, {pipeline_mode = #tpu.pipeline_mode<synchronous>, transform_indices = @transform_5, window_bounds = array<i64: 8, 20>}]} {
    %c0 = arith.constant 0 : index
    %c0_0 = arith.constant 0 : index
    %0 = vector.load %arg5[%c0, %c0_0] : memref<1x384xf32, #tpu.memory_space<vmem>>, vector<1x128xf32>
    %c0_1 = arith.constant 0 : index
    %c128 = arith.constant 128 : index
    %1 = vector.load %arg5[%c0_1, %c128] : memref<1x384xf32, #tpu.memory_space<vmem>>, vector<1x64xf32>
    %c0_2 = arith.constant 0 : index
    %c256 = arith.constant 256 : index
    %2 = vector.load %arg5[%c0_2, %c256] : memref<1x384xf32, #tpu.memory_space<vmem>>, vector<1x20xf32>
    %c0_3 = arith.constant 0 : index
    %c0_4 = arith.constant 0 : index
    %3 = vector.load %arg1[%c0_3, %c0_4] : memref<8x512xf32, #tpu.memory_space<vmem>>, vector<8x512xf32>
    %c0_5 = arith.constant 0 : index
    %c0_6 = arith.constant 0 : index
    %4 = vector.load %arg2[%c0_5, %c0_6] : memref<512x128xf32, #tpu.memory_space<vmem>>, vector<512x128xf32>
    %cst = arith.constant dense<0.000000e+00> : vector<8x128xf32>
    %5 = tpu.matmul %3, %4, %cst {dimension_numbers = #tpu.dot_dimension_numbers<[1], [0], [0], [1], [0, 0, 1, 1], [], []>} : vector<8x512xf32>, vector<512x128xf32>, vector<8x128xf32> -> vector<8x128xf32>
    %6 = vector.broadcast %0 : vector<1x128xf32> to vector<8x128xf32>
    %7 = arith.addf %5, %6 : vector<8x128xf32>
    %cst_7 = arith.constant 0.000000e+00 : f32
    %8 = vector.broadcast %cst_7 : f32 to vector<8x128xf32>
    %9 = arith.maximumf %7, %8 : vector<8x128xf32>
    %c0_8 = arith.constant 0 : index
    %c0_9 = arith.constant 0 : index
    %10 = vector.load %arg3[%c0_8, %c0_9] : memref<128x64xf32, #tpu.memory_space<vmem>>, vector<128x64xf32>
    %cst_10 = arith.constant dense<0.000000e+00> : vector<8x64xf32>
    %11 = tpu.matmul %9, %10, %cst_10 {dimension_numbers = #tpu.dot_dimension_numbers<[1], [0], [0], [1], [0, 0, 1, 1], [], []>} : vector<8x128xf32>, vector<128x64xf32>, vector<8x64xf32> -> vector<8x64xf32>
    %12 = vector.broadcast %1 : vector<1x64xf32> to vector<8x64xf32>
    %13 = arith.addf %11, %12 : vector<8x64xf32>
    %cst_11 = arith.constant 0.000000e+00 : f32
    %14 = vector.broadcast %cst_11 : f32 to vector<8x64xf32>
    %15 = arith.maximumf %13, %14 : vector<8x64xf32>
    %c0_12 = arith.constant 0 : index
    %c0_13 = arith.constant 0 : index
    %16 = vector.load %arg4[%c0_12, %c0_13] : memref<64x20xf32, #tpu.memory_space<vmem>>, vector<64x20xf32>
    %cst_14 = arith.constant dense<0.000000e+00> : vector<8x20xf32>
    %17 = tpu.matmul %15, %16, %cst_14 {dimension_numbers = #tpu.dot_dimension_numbers<[1], [0], [0], [1], [0, 0, 1, 1], [], []>} : vector<8x64xf32>, vector<64x20xf32>, vector<8x20xf32> -> vector<8x20xf32>
    %18 = vector.broadcast %2 : vector<1x20xf32> to vector<8x20xf32>
    %19 = arith.addf %17, %18 : vector<8x20xf32>
    %cst_15 = arith.constant 0.000000e+00 : f32
    %20 = vector.broadcast %cst_15 : f32 to vector<8x20xf32>
    %21 = arith.maximumf %19, %20 : vector<8x20xf32>
    %c0_16 = arith.constant 0 : index
    %c0_17 = arith.constant 0 : index
    %22 = vector.load %arg6[%c0_16, %c0_17] : memref<8x20xf32, #tpu.memory_space<vmem>>, vector<8x20xf32>
    tpu.vector_store %arg6[%c0_16, %c0_17], %21 {strides = array<i32>} : memref<8x20xf32, #tpu.memory_space<vmem>>, vector<8x20xf32>,
    return
  }
  func.func @transform_0(%arg0: i32) -> (i32, i32) {
    %c0_i32 = arith.constant 0 : i32
    %c0_i32_0 = arith.constant 0 : i32
    %c0_i32_1 = arith.constant 0 : i32
    return %c0_i32, %c0_i32_0 : i32, i32
  }
  func.func @transform_1(%arg0: i32) -> (i32, i32) {
    %c0_i32 = arith.constant 0 : i32
    %c0_i32_0 = arith.constant 0 : i32
    %c0_i32_1 = arith.constant 0 : i32
    return %c0_i32, %c0_i32_0 : i32, i32
  }
  func.func @transform_2(%arg0: i32) -> (i32, i32) {
    %c0_i32 = arith.constant 0 : i32
    %c0_i32_0 = arith.constant 0 : i32
    %c0_i32_1 = arith.constant 0 : i32
    return %c0_i32, %c0_i32_0 : i32, i32
  }
  func.func @transform_3(%arg0: i32) -> (i32, i32) {
    %c0_i32 = arith.constant 0 : i32
    %c0_i32_0 = arith.constant 0 : i32
    %c0_i32_1 = arith.constant 0 : i32
    return %c0_i32, %c0_i32_0 : i32, i32
  }
  func.func @transform_4(%arg0: i32) -> (i32, i32) {
    %c0_i32 = arith.constant 0 : i32
    %c0_i32_0 = arith.constant 0 : i32
    %c0_i32_1 = arith.constant 0 : i32
    return %c0_i32, %c0_i32_0 : i32, i32
  }
  func.func @transform_5(%arg0: i32) -> (i32, i32) {
    %c0_i32 = arith.constant 0 : i32
    %c0_i32_0 = arith.constant 0 : i32
    %c0_i32_1 = arith.constant 0 : i32
    return %c0_i32, %c0_i32_0 : i32, i32
  }
}

module attributes {stable_mosaic.version = 11 : i64} {
  func.func @_decoder_kernel(%arg0: i32, %arg1: i32, %arg2: memref<8x20xf32, #tpu.memory_space<vmem>>, %arg3: memref<1x20x64xf32, #tpu.memory_space<vmem>>, %arg4: memref<1x64x128xf32, #tpu.memory_space<vmem>>, %arg5: memref<1x1x256xf32, #tpu.memory_space<vmem>>, %arg6: memref<1x128x512xbf16, #tpu.memory_space<vmem>>, %arg7: memref<1x1x512xf32, #tpu.memory_space<vmem>>, %arg8: memref<8x512xf32, #tpu.memory_space<vmem>>, %arg9: memref<8x128xf32, #tpu.memory_space<vmem>>) attributes {dimension_semantics = [#tpu.dimension_semantics<parallel>, #tpu.dimension_semantics<arbitrary>], iteration_bounds = array<i64: 7, 1>, scalar_prefetch = 0 : i64, scratch_operands = 1 : i64, tpu.core_type = #tpu.core_type<tc>, window_params = [{pipeline_mode = #tpu.pipeline_mode<synchronous>, transform_indices = @transform_0, window_bounds = array<i64: 8, 20>}, {transform_indices = @transform_1, window_bounds = array<i64: 1, 20, 64>}, {transform_indices = @transform_2, window_bounds = array<i64: 1, 64, 128>}, {transform_indices = @transform_3, window_bounds = array<i64: 1, 1, 256>}, {transform_indices = @transform_4, window_bounds = array<i64: 1, 128, 512>}, {transform_indices = @transform_5, window_bounds = array<i64: 1, 1, 512>}, {transform_indices = @transform_6, window_bounds = array<i64: 8, 512>}]} {
    %c0_i32 = arith.constant 0 : i32
    %0 = arith.cmpi eq, %arg1, %c0_i32 : i32
    %1 = arith.extui %0 : i1 to i32
    %c0_i32_0 = arith.constant 0 : i32
    %2 = arith.cmpi ne, %1, %c0_i32_0 : i32
    scf.if %2 {
      %c0_10 = arith.constant 0 : index
      %c0_11 = arith.constant 0 : index
      %c0_12 = arith.constant 0 : index
      %13 = vector.load %arg5[%c0_10, %c0_11, %c0_12] : memref<1x1x256xf32, #tpu.memory_space<vmem>>, vector<1x1x64xf32>
      %14 = vector.shape_cast %13 : vector<1x1x64xf32> to vector<1x64xf32>
      %c0_13 = arith.constant 0 : index
      %c0_14 = arith.constant 0 : index
      %c128 = arith.constant 128 : index
      %15 = vector.load %arg5[%c0_13, %c0_14, %c128] : memref<1x1x256xf32, #tpu.memory_space<vmem>>, vector<1x1x128xf32>
      %16 = vector.shape_cast %15 : vector<1x1x128xf32> to vector<1x128xf32>
      %c0_15 = arith.constant 0 : index
      %c0_16 = arith.constant 0 : index
      %17 = vector.load %arg2[%c0_15, %c0_16] : memref<8x20xf32, #tpu.memory_space<vmem>>, vector<8x20xf32>
      %c0_17 = arith.constant 0 : index
      %c0_18 = arith.constant 0 : index
      %c0_19 = arith.constant 0 : index
      %18 = vector.load %arg3[%c0_17, %c0_18, %c0_19] : memref<1x20x64xf32, #tpu.memory_space<vmem>>, vector<1x20x64xf32>
      %19 = vector.shape_cast %18 : vector<1x20x64xf32> to vector<20x64xf32>
      %cst_20 = arith.constant dense<0.000000e+00> : vector<8x64xf32>
      %20 = tpu.matmul %17, %19, %cst_20 {dimension_numbers = #tpu.dot_dimension_numbers<[1], [0], [0], [1], [0, 0, 1, 1], [], []>} : vector<8x20xf32>, vector<20x64xf32>, vector<8x64xf32> -> vector<8x64xf32>
      %21 = vector.broadcast %14 : vector<1x64xf32> to vector<8x64xf32>
      %22 = arith.addf %20, %21 : vector<8x64xf32>
      %cst_21 = arith.constant 0.000000e+00 : f32
      %23 = vector.broadcast %cst_21 : f32 to vector<8x64xf32>
      %24 = arith.maximumf %22, %23 : vector<8x64xf32>
      %c0_22 = arith.constant 0 : index
      %c0_23 = arith.constant 0 : index
      %c0_24 = arith.constant 0 : index
      %25 = vector.load %arg4[%c0_22, %c0_23, %c0_24] : memref<1x64x128xf32, #tpu.memory_space<vmem>>, vector<1x64x128xf32>
      %26 = vector.shape_cast %25 : vector<1x64x128xf32> to vector<64x128xf32>
      %cst_25 = arith.constant dense<0.000000e+00> : vector<8x128xf32>
      %27 = tpu.matmul %24, %26, %cst_25 {dimension_numbers = #tpu.dot_dimension_numbers<[1], [0], [0], [1], [0, 0, 1, 1], [], []>} : vector<8x64xf32>, vector<64x128xf32>, vector<8x128xf32> -> vector<8x128xf32>
      %28 = vector.broadcast %16 : vector<1x128xf32> to vector<8x128xf32>
      %29 = arith.addf %27, %28 : vector<8x128xf32>
      %cst_26 = arith.constant 0.000000e+00 : f32
      %30 = vector.broadcast %cst_26 : f32 to vector<8x128xf32>
      %31 = arith.maximumf %29, %30 : vector<8x128xf32>
      %c0_27 = arith.constant 0 : index
      %c0_28 = arith.constant 0 : index
      %32 = vector.load %arg9[%c0_27, %c0_28] : memref<8x128xf32, #tpu.memory_space<vmem>>, vector<8x128xf32>
      tpu.vector_store %arg9[%c0_27, %c0_28], %31 {strides = array<i32>} : memref<8x128xf32, #tpu.memory_space<vmem>>, vector<8x128xf32>,
    } else {
    }
    %c0 = arith.constant 0 : index
    %c0_1 = arith.constant 0 : index
    %c0_2 = arith.constant 0 : index
    %3 = vector.load %arg7[%c0, %c0_1, %c0_2] : memref<1x1x512xf32, #tpu.memory_space<vmem>>, vector<1x1x512xf32>
    %4 = vector.shape_cast %3 : vector<1x1x512xf32> to vector<1x512xf32>
    %c0_3 = arith.constant 0 : index
    %c0_4 = arith.constant 0 : index
    %5 = vector.load %arg9[%c0_3, %c0_4] : memref<8x128xf32, #tpu.memory_space<vmem>>, vector<8x128xf32>
    %6 = arith.truncf %5 : vector<8x128xf32> to vector<8x128xbf16>
    %c0_5 = arith.constant 0 : index
    %c0_6 = arith.constant 0 : index
    %c0_7 = arith.constant 0 : index
    %7 = vector.load %arg6[%c0_5, %c0_6, %c0_7] : memref<1x128x512xbf16, #tpu.memory_space<vmem>>, vector<1x128x512xbf16>
    %8 = vector.shape_cast %7 : vector<1x128x512xbf16> to vector<128x512xbf16>
    %cst = arith.constant dense<0.000000e+00> : vector<8x512xf32>
    %9 = tpu.matmul %6, %8, %cst {dimension_numbers = #tpu.dot_dimension_numbers<[1], [0], [0], [1], [0, 0, 1, 1], [], []>} : vector<8x128xbf16>, vector<128x512xbf16>, vector<8x512xf32> -> vector<8x512xf32>
    %10 = vector.broadcast %4 : vector<1x512xf32> to vector<8x512xf32>
    %11 = arith.addf %9, %10 : vector<8x512xf32>
    %c0_8 = arith.constant 0 : index
    %c0_9 = arith.constant 0 : index
    %12 = vector.load %arg8[%c0_8, %c0_9] : memref<8x512xf32, #tpu.memory_space<vmem>>, vector<8x512xf32>
    tpu.vector_store %arg8[%c0_8, %c0_9], %11 {strides = array<i32>} : memref<8x512xf32, #tpu.memory_space<vmem>>, vector<8x512xf32>,
    return
  }
  func.func @transform_0(%arg0: i32, %arg1: i32) -> (i32, i32) {
    %c0_i32 = arith.constant 0 : i32
    %c0_i32_0 = arith.constant 0 : i32
    %c0_i32_1 = arith.constant 0 : i32
    return %c0_i32, %c0_i32_0 : i32, i32
  }
  func.func @transform_1(%arg0: i32, %arg1: i32) -> (i32, i32, i32) {
    %c0_i32 = arith.constant 0 : i32
    %c0_i32_0 = arith.constant 0 : i32
    %c0_i32_1 = arith.constant 0 : i32
    return %arg0, %c0_i32, %c0_i32_0 : i32, i32, i32
  }
  func.func @transform_2(%arg0: i32, %arg1: i32) -> (i32, i32, i32) {
    %c0_i32 = arith.constant 0 : i32
    %c0_i32_0 = arith.constant 0 : i32
    %c0_i32_1 = arith.constant 0 : i32
    return %arg0, %c0_i32, %c0_i32_0 : i32, i32, i32
  }
  func.func @transform_3(%arg0: i32, %arg1: i32) -> (i32, i32, i32) {
    %c0_i32 = arith.constant 0 : i32
    %c0_i32_0 = arith.constant 0 : i32
    %c0_i32_1 = arith.constant 0 : i32
    return %arg0, %c0_i32, %c0_i32_0 : i32, i32, i32
  }
  func.func @transform_4(%arg0: i32, %arg1: i32) -> (i32, i32, i32) {
    %c0_i32 = arith.constant 0 : i32
    %c0_i32_0 = arith.constant 0 : i32
    return %arg0, %c0_i32, %arg1 : i32, i32, i32
  }
  func.func @transform_5(%arg0: i32, %arg1: i32) -> (i32, i32, i32) {
    %c0_i32 = arith.constant 0 : i32
    %c0_i32_0 = arith.constant 0 : i32
    %c0_i32_1 = arith.constant 0 : i32
    return %arg0, %c0_i32, %c0_i32_0 : i32, i32, i32
  }
  func.func @transform_6(%arg0: i32, %arg1: i32) -> (i32, i32) {
    %c1_i32 = arith.constant 1 : i32
    %0 = arith.muli %arg0, %c1_i32 : i32
    %1 = arith.addi %0, %arg1 : i32
    %c0_i32 = arith.constant 0 : i32
    %c0_i32_0 = arith.constant 0 : i32
    return %c0_i32, %1 : i32, i32
  }
}

</mosaic_0001>

<bundles_post_ra>
// kernel: ecg_stacked_ae_forward.2
= control target key start
LH: loop header
LB: loop body
LE: loop exit
PB: predicated region body
PF: predicated region fallthrough
CT: control target
= control target key end

     0   :  { %10 = vsyncpa [#allocation3], 0  ;;  %s303_s21 = smov [#allocation2]   ;;  %s613_s0 = inlined_call_operand.hbm [shape: f32[8,512], index: 0, kind: input, shape index: {}]   ;;  %s614_s1 = inlined_call_operand.vmem [shape: f32[512,128], index: 1, kind: input, shape index: {}]   ;;  %s615_s2 = inlined_call_operand.vmem [shape: f32[128,64], index: 2, kind: input, shape index: {}]   ;;  %s616_s3 = inlined_call_operand.vmem [shape: f32[64,20], index: 3, kind: input, shape index: {}]   ;;  %s617_s4 = inlined_call_operand.vmem [shape: f32[1,384], index: 4, kind: input, shape index: {}]   ;;  %s618_s5 = inlined_call_operand.vmem [shape: f32[8,20], index: 5, kind: output, shape index: {}]  }
   0x1   :  { %s16_s20 = sshll.u32 %s613_s0, 4  ;;  %s18_s22 = sshll.u32 %s303_s21, 4  ;;  %s17_s20 = int_to_ptr.hbm [resolvable:$true] %s16_s20  ;;  %s19_s22 = int_to_ptr.vmem [resolvable:$true] %s18_s22 }
   0x2   :  { %21 = dma.hbm_to_vmem [thread:$0]  %s17_s20, 512, %s19_s22, [#allocation3]  }
   0x3   :  { %301 = dma.done.wait [#allocation3], 512  }
   0x4   :  { %302 = vsyncadd [#allocation3], 4294966784  ;;  %v88_v0 = vld [vmem:[%s614_s1 + $0x178] sm:$0xff]  ;;  %v87_v2 = vld [vmem:[%s614_s1 + $0x170] sm:$0xff]  ;;  %vm240_vm0 = vcmask 523264   ;;  %vm265_vm1 = vcmask 162816  }
   0x5   :  { %v56_v1 = vld [vmem:[%s614_s1 + $0x78] sm:$0xff]  ;;  %148 = vmatpush.msra.mxu2 %v88_v0  ;;  %v55_v4 = vld [vmem:[%s614_s1 + $0x70] sm:$0xff]  ;;  %v86_v6 = vld [vmem:[%s614_s1 + $0x168] sm:$0xff] }
   0x6   :  { %108 = vmatpush.msra.mxu0 %v56_v1  ;;  %v104_v3 = vld [vmem:[%s614_s1 + $0x1f8] sm:$0xff]  ;;  %v103_v7 = vld [vmem:[%s614_s1 + $0x1f0] sm:$0xff]  ;;  %v54_v8 = vld [vmem:[%s614_s1 + $0x68] sm:$0xff] }
   0x7   :  { %v72_v5 = vld [vmem:[%s614_s1 + $0xf8] sm:$0xff]  ;;  %168 = vmatpush.msra.mxu3 %v104_v3  ;;  %149 = vmatpush.msra.mxu2 %v87_v2  ;;  %v71_v9 = vld [vmem:[%s614_s1 + $0xf0] sm:$0xff]  ;;  %v102_v10 = vld [vmem:[%s614_s1 + $0x1e8] sm:$0xff] }
   0x8   :  { %128 = vmatpush.msra.mxu1 %v72_v5  ;;  %109 = vmatpush.msra.mxu0 %v55_v4  ;;  %v85_v11 = vld [vmem:[%s614_s1 + $0x160] sm:$0xff]  ;;  %v70_v13 = vld [vmem:[%s614_s1 + $0xe8] sm:$0xff]  ;;  %v84_v16 = vld [vmem:[%s614_s1 + $0x158] sm:$0xff] }
   0x9   :  { %169 = vmatpush.msra.mxu3 %v103_v7  ;;  %v53_v12 = vld [vmem:[%s614_s1 + $0x60] sm:$0xff]  ;;  %150 = vmatpush.msra.mxu2 %v86_v6  ;;  %v52_v17 = vld [vmem:[%s614_s1 + $0x58] sm:$0xff]  ;;  %v83_v20 = vld [vmem:[%s614_s1 + $0x150] sm:$0xff] }
   0xa   :  { %129 = vmatpush.msra.mxu1 %v71_v9  ;;  %110 = vmatpush.msra.mxu0 %v54_v8  ;;  %v101_v14 = vld [vmem:[%s614_s1 + $0x1e0] sm:$0xff]  ;;  %v100_v18 = vld [vmem:[%s614_s1 + $0x1d8] sm:$0xff]  ;;  %v51_v21 = vld [vmem:[%s614_s1 + $0x50] sm:$0xff] }
   0xb   :  { %v69_v15 = vld [vmem:[%s614_s1 + $0xe0] sm:$0xff]  ;;  %170 = vmatpush.msra.mxu3 %v102_v10  ;;  %151 = vmatpush.msra.mxu2 %v85_v11  ;;  %v68_v19 = vld [vmem:[%s614_s1 + $0xd8] sm:$0xff]  ;;  %v99_v22 = vld [vmem:[%s614_s1 + $0x1d0] sm:$0xff] }
   0xc   :  { %130 = vmatpush.msra.mxu1 %v70_v13  ;;  %111 = vmatpush.msra.mxu0 %v53_v12  ;;  %v67_v23 = vld [vmem:[%s614_s1 + $0xd0] sm:$0xff]  ;;  %v82_v24 = vld [vmem:[%s614_s1 + $0x148] sm:$0xff]  ;;  %v81_v28 = vld [vmem:[%s614_s1 + $0x140] sm:$0xff] }
   0xd   :  { %171 = vmatpush.msra.mxu3 %v101_v14  ;;  %152 = vmatpush.msra.mxu2 %v84_v16  ;;  %v50_v25 = vld [vmem:[%s614_s1 + $0x48] sm:$0xff]  ;;  %v49_v29 = vld [vmem:[%s614_s1 + $0x40] sm:$0xff]  ;;  %v80_v32 = vld [vmem:[%s614_s1 + $0x138] sm:$0xff] }
   0xe   :  { %131 = vmatpush.msra.mxu1 %v69_v15  ;;  %112 = vmatpush.msra.mxu0 %v52_v17  ;;  %v98_v26 = vld [vmem:[%s614_s1 + $0x1c8] sm:$0xff]  ;;  %v97_v30 = vld [vmem:[%s614_s1 + $0x1c0] sm:$0xff]  ;;  %v48_v33 = vld [vmem:[%s614_s1 + $0x38] sm:$0xff] }
   0xf   :  { %172 = vmatpush.msra.mxu3 %v100_v18  ;;  %153 = vmatpush.msra.mxu2 %v83_v20  ;;  %v66_v27 = vld [vmem:[%s614_s1 + $0xc8] sm:$0xff]  ;;  %v65_v31 = vld [vmem:[%s614_s1 + $0xc0] sm:$0xff]  ;;  %v96_v34 = vld [vmem:[%s614_s1 + $0x1b8] sm:$0xff] }
  0x10   :  { %132 = vmatpush.msra.mxu1 %v68_v19  ;;  %113 = vmatpush.msra.mxu0 %v51_v21  ;;  %v64_v35 = vld [vmem:[%s614_s1 + $0xb8] sm:$0xff]  ;;  %v79_v36 = vld [vmem:[%s614_s1 + $0x130] sm:$0xff]  ;;  %v78_v40 = vld [vmem:[%s614_s1 + $0x128] sm:$0xff] }
  0x11   :  { %173 = vmatpush.msra.mxu3 %v99_v22  ;;  %154 = vmatpush.msra.mxu2 %v82_v24  ;;  %v47_v37 = vld [vmem:[%s614_s1 + $0x30] sm:$0xff]  ;;  %v46_v41 = vld [vmem:[%s614_s1 + $0x28] sm:$0xff]  ;;  %v77_v44 = vld [vmem:[%s614_s1 + $0x120] sm:$0xff] }
  0x12   :  { %133 = vmatpush.msra.mxu1 %v67_v23  ;;  %114 = vmatpush.msra.mxu0 %v50_v25  ;;  %v95_v38 = vld [vmem:[%s614_s1 + $0x1b0] sm:$0xff]  ;;  %v94_v42 = vld [vmem:[%s614_s1 + $0x1a8] sm:$0xff]  ;;  %v45_v45 = vld [vmem:[%s614_s1 + $0x20] sm:$0xff] }
  0x13   :  { %174 = vmatpush.msra.mxu3 %v98_v26  ;;  %155 = vmatpush.msra.mxu2 %v81_v28  ;;  %v63_v39 = vld [vmem:[%s614_s1 + $0xb0] sm:$0xff]  ;;  %v62_v43 = vld [vmem:[%s614_s1 + $0xa8] sm:$0xff]  ;;  %v93_v46 = vld [vmem:[%s614_s1 + $0x1a0] sm:$0xff] }
  0x14   :  { %134 = vmatpush.msra.mxu1 %v66_v27  ;;  %115 = vmatpush.msra.mxu0 %v49_v29  ;;  %v61_v47 = vld [vmem:[%s614_s1 + $0xa0] sm:$0xff]  ;;  %v76_v48 = vld [vmem:[%s614_s1 + $0x118] sm:$0xff]  ;;  %v75_v52 = vld [vmem:[%s614_s1 + $0x110] sm:$0xff] }
  0x15   :  { %175 = vmatpush.msra.mxu3 %v97_v30  ;;  %156 = vmatpush.msra.mxu2 %v80_v32  ;;  %v44_v49 = vld [vmem:[%s614_s1 + $0x18] sm:$0xff]  ;;  %v43_v53 = vld [vmem:[%s614_s1 + $0x10] sm:$0xff]  ;;  %v74_v54 = vld [vmem:[%s614_s1 + $0x108] sm:$0xff] }
  0x16   :  { %135 = vmatpush.msra.mxu1 %v65_v31  ;;  %116 = vmatpush.msra.mxu0 %v48_v33  ;;  %v92_v50 = vld [vmem:[%s614_s1 + $0x198] sm:$0xff]  ;;  %v91_v55 = vld [vmem:[%s614_s1 + $0x190] sm:$0xff]  ;;  %v42_v57 = vld [vmem:[%s614_s1 + $0x8] sm:$0xff] }
  0x17   :  { %176 = vmatpush.msra.mxu3 %v96_v34  ;;  %157 = vmatpush.msra.mxu2 %v79_v36  ;;  %v60_v51 = vld [vmem:[%s614_s1 + $0x98] sm:$0xff]  ;;  %v59_v56 = vld [vmem:[%s614_s1 + $0x90] sm:$0xff]  ;;  %v90_v58 = vld [vmem:[%s614_s1 + $0x188] sm:$0xff] }
  0x18   :  { %136 = vmatpush.msra.mxu1 %v64_v35  ;;  %117 = vmatpush.msra.mxu0 %v47_v37  ;;  %v58_v59 = vld [vmem:[%s614_s1 + $0x88] sm:$0xff]  ;;  %v73_v60 = vld [vmem:[%s614_s1 + $0x100] sm:$0xff]  ;;  %v39_v62 = vld [vmem:[#allocation2 + $0x10] sm:$0xff] }
  0x19   :  { %177 = vmatpush.msra.mxu3 %v95_v38  ;;  %158 = vmatpush.msra.mxu2 %v78_v40  ;;  %v41_v61 = vld [vmem:[%s614_s1] sm:$0xff]  ;;  %v40_v1 = vld [vmem:[#allocation2 + $0x18] sm:$0xff]  ;;  %v38_v4 = vld [vmem:[#allocation2 + $0x8] sm:$0xff] }
  0x1a   :  { %137 = vmatpush.msra.mxu1 %v63_v39  ;;  %118 = vmatpush.msra.mxu0 %v46_v41  ;;  %v89_v63 = vld [vmem:[%s614_s1 + $0x180] sm:$0xff]  ;;  %v204_v3 = vld [vmem:[%s615_s2 + $0x78] sm:$0xff]  ;;  %v203_v5 = vld [vmem:[%s615_s2 + $0x70] sm:$0xff] }
  0x1b   :  { %178 = vmatpush.msra.mxu3 %v94_v42  ;;  %159 = vmatpush.msra.mxu2 %v77_v44  ;;  %v37_v0 = vld [vmem:[#allocation2] sm:$0xff]  ;;  %v202_v6 = vld [vmem:[%s615_s2 + $0x68] sm:$0xff]  ;;  %v200_v8 = vld [vmem:[%s615_s2 + $0x58] sm:$0xff] }
  0x1c   :  { %138 = vmatpush.msra.mxu1 %v62_v43  ;;  %119 = vmatpush.msra.mxu0 %v45_v45  ;;  %v57_v2 = vld [vmem:[%s614_s1 + $0x80] sm:$0xff]  ;;  %v199_v9 = vld [vmem:[%s615_s2 + $0x50] sm:$0xff]  ;;  %v198_v10 = vld [vmem:[%s615_s2 + $0x48] sm:$0xff] }
  0x1d   :  { %179 = vmatpush.msra.mxu3 %v93_v46  ;;  %160 = vmatpush.msra.mxu2 %v76_v48  ;;  %v201_v7 = vld [vmem:[%s615_s2 + $0x60] sm:$0xff]  ;;  %v196_v12 = vld [vmem:[%s615_s2 + $0x38] sm:$0xff]  ;;  %v195_v13 = vld [vmem:[%s615_s2 + $0x30] sm:$0xff] }
  0x1e   :  { %139 = vmatpush.msra.mxu1 %v61_v47  ;;  %120 = vmatpush.msra.mxu0 %v44_v49  ;;  %v197_v11 = vld [vmem:[%s615_s2 + $0x40] sm:$0xff]  ;;  %v194_v14 = vld [vmem:[%s615_s2 + $0x28] sm:$0xff]  ;;  %v192_v16 = vld [vmem:[%s615_s2 + $0x18] sm:$0xff] }
  0x1f   :  { %180 = vmatpush.msra.mxu3 %v92_v50  ;;  %161 = vmatpush.msra.mxu2 %v75_v52  ;;  %v193_v15 = vld [vmem:[%s615_s2 + $0x20] sm:$0xff]  ;;  %v191_v17 = vld [vmem:[%s615_s2 + $0x10] sm:$0xff]  ;;  %v190_v18 = vld [vmem:[%s615_s2 + $0x8] sm:$0xff] }
  0x20   :  { %140 = vmatpush.msra.mxu1 %v60_v51  ;;  %121 = vmatpush.msra.mxu0 %v43_v53  ;;  %v189_v19 = vld [vmem:[%s615_s2] sm:$0xff]  ;;  %v236_v20 = vld [vmem:[%s616_s3 + $0x38] sm:$0xff]  ;;  %v235_v21 = vld [vmem:[%s616_s3 + $0x30] sm:$0xff] }
  0x21   :  { %181 = vmatpush.msra.mxu3 %v91_v55  ;;  %162 = vmatpush.msra.mxu2 %v74_v54  ;;  %v234_v22 = vld [vmem:[%s616_s3 + $0x28] sm:$0xff]  ;;  %v233_v23 = vld [vmem:[%s616_s3 + $0x20] sm:$0xff]  ;;  %v232_v24 = vld [vmem:[%s616_s3 + $0x18] sm:$0xff] }
  0x22   :  { %141 = vmatpush.msra.mxu1 %v59_v56  ;;  %122 = vmatpush.msra.mxu0 %v42_v57  ;;  %v274_v25 = vld [vmem:[%s617_s4] ss:$0 sm:$0xff]  ;;  %v231_v35 = vld [vmem:[%s616_s3 + $0x10] sm:$0xff]  ;;  %v230_v36 = vld [vmem:[%s616_s3 + $0x8] sm:$0xff] }
  0x23   :  { %182 = vmatpush.msra.mxu3 %v90_v58  ;;  %163 = vmatpush.msra.mxu2 %v73_v60  ;;  %v229_v37 = vld [vmem:[%s616_s3] sm:$0xff] }
  0x24   :  { %142 = vmatpush.msra.mxu1 %v58_v59  ;;  %123 = vmatpush.msra.mxu0 %v41_v61  ;;  %v275_v38 = vld [vmem:[%s617_s4 + $0x1] ss:$0 sm:$0xff]  ;;  %v276_v42 = vld [vmem:[%s617_s4 + $0x2] ss:$0 sm:$0xff] }
  0x25   :  { %164 = vmatmul.f32.vlgmr.msra.gmra.mxu2 %v39_v62  ;;  %183 = vmatpush.msra.mxu3 %v89_v63 }
  0x26   :  { %124 = vmatmul.f32.vlgmr.msra.gmra.mxu0 %v37_v0  ;;  %184 = vmatmul.f32.vlgmr.msra.gmra.mxu3 %v40_v1 }
  0x27   :  { %143 = vmatpush.msra.mxu1 %v57_v2  ;;  %208 = vmatpush.msrb.mxu0 %v204_v3 }
  0x28   :  { %144 = vmatmul.f32.vlgmr.msra.gmra.mxu1 %v38_v4 }
  0x29   :  { %209 = vmatpush.msrb.mxu0 %v203_v5  ;;  %252 = vmatpush.msrb.mxu1 %v236_v20 }
  0x2b   :  { %210 = vmatpush.msrb.mxu0 %v202_v6  ;;  %253 = vmatpush.msrb.mxu1 %v235_v21 }
  0x2d   :  { %211 = vmatpush.msrb.mxu0 %v201_v7  ;;  %254 = vmatpush.msrb.mxu1 %v234_v22 }
  0x2f   :  { %212 = vmatpush.msrb.mxu0 %v200_v8  ;;  %255 = vmatpush.msrb.mxu1 %v233_v23 }
  0x31   :  { %213 = vmatpush.msrb.mxu0 %v199_v9  ;;  %256 = vmatpush.msrb.mxu1 %v232_v24 }
  0x33   :  { %214 = vmatpush.msrb.mxu0 %v198_v10  ;;  %257 = vmatpush.msrb.mxu1 %v231_v35 }
  0x35   :  { %215 = vmatpush.msrb.mxu0 %v197_v11  ;;  %258 = vmatpush.msrb.mxu1 %v230_v36 }
  0x37   :  { %216 = vmatpush.msrb.mxu0 %v196_v12  ;;  %259 = vmatpush.msrb.mxu1 %v229_v37 }
  0x39   :  { %217 = vmatpush.msrb.mxu0 %v195_v13 }
  0x3b   :  { %218 = vmatpush.msrb.mxu0 %v194_v14 }
  0x3d   :  { %219 = vmatpush.msrb.mxu0 %v193_v15 }
  0x3f   :  { %220 = vmatpush.msrb.mxu0 %v192_v16 }
  0x41   :  { %221 = vmatpush.msrb.mxu0 %v191_v17 }
  0x43   :  { %222 = vmatpush.msrb.mxu0 %v190_v18 }
  0x45   :  { %223 = vmatpush.msrb.mxu0 %v189_v19 }
  0xa3   :  { %v125_v26 = vpop.f32.mrf.mxu0 }
  0xa4   :  { %v126_v27 = vadd.f32 %v274_v25, %v125_v26 }
  0xa5   :  { %v145_v28 = vpop.f32.mrf.mxu1 }
  0xa6   :  { %v146_v29 = vadd.f32 %v145_v28, %v126_v27 }
  0xa8   :  { %v165_v30 = vpop.f32.mrf.mxu2 }
  0xa9   :  { %v166_v31 = vadd.f32 %v165_v30, %v146_v29  ;;  %v185_v32 = vpop.f32.mrf.mxu3 }
  0xab   :  { %v186_v33 = vadd.f32 %v185_v32, %v166_v31 }
  0xad   :  { %v188_v34 = vmax.f32 %v186_v33, 0.0 }
  0xaf   :  { %224 = vmatmul.f32.vlgmr.msrb.gmra.mxu0 %v188_v34 }
 0x12c   :  { %v225_v39 = vpop.f32.mrf.mxu0 }
 0x12d   :  { %v226_v40 = vadd.f32 %v275_v38, %v225_v39 }
 0x12f   :  { %v228_v41 = vmax.f32 %v226_v40, 0.0 }
 0x131   :  { %272 = vmatmul.msk.f32.vlgmr.msrb.gmra.mxu1 %vm240_vm0, %v228_v41 }
 0x1ae   :  { %v261_v43 = vpop.f32.mrf.mxu1 }
 0x1af   :  { %v262_v44 = vadd.f32 %v276_v42, %v261_v43 }
 0x1b1   :  { %v264_v45 = vmax.f32 %v262_v44, 0.0 }
 0x1b3   :  { %266 = vst.msk [vmem:[%s618_s5] sm:$0xff] %vm265_vm1, %v264_v45 }
 0x1b4   :  { %271 = vsyncpa [#allocation3], 1 }

// kernel: ecg_stacked_ae_forward.3
= control target key start
LH: loop header
LB: loop body
LE: loop exit
PB: predicated region body
PF: predicated region fallthrough
CT: control target
= control target key end

     0   :  { %11 = vsyncpa [#allocation4], 0  ;;  %s1381_s0 = inlined_call_operand.vmem [shape: f32[8,20], index: 0, kind: input, shape index: {}]   ;;  %s1382_s1 = inlined_call_operand.vmem [shape: f32[7,20,64], index: 1, kind: input, shape index: {}]   ;;  %s1383_s2 = inlined_call_operand.vmem [shape: f32[7,64,128], index: 2, kind: input, shape index: {}]   ;;  %s1384_s3 = inlined_call_operand.vmem [shape: f32[7,1,256], index: 3, kind: input, shape index: {}]   ;;  %s1385_s4 = inlined_call_operand.vmem [shape: bf16[7,128,512], index: 4, kind: input, shape index: {}]   ;;  %s1386_s5 = inlined_call_operand.vmem [shape: f32[7,1,512], index: 5, kind: input, shape index: {}]   ;;  %s1387_s6 = inlined_call_operand.hbm [shape: f32[8,3584], index: 6, kind: output, shape index: {}]  }
   0x1   :  { %13 = vsyncpa [#allocation4 + $0x1], 0  ;;  %s1192_s21 = smov 0   ;;  %s1194_s22 = smov 0  }
   0x2   :  { %s1196_s23 = smov 0   ;;  %s1198_s24 = smov 0  }
   0x3   :  { %s1200_s25 = smov 0   ;;  %s1202_s26 = smov 0  }
   0x4 LB: > { %s835_s27 = sadd.s32 4294967295, %s1155_s26   ;;  %s836_s28 = sadd.s32 4294967294, %s1155_s26   ;;  %s1155_s26 = sphi %s1202_s26, %s19_s26   ;;  %s1151_s25 = sphi %s1200_s25, %s1394_s25   ;;  %s1147_s24 = sphi %s1198_s24, %s1393_s24   ;;  %s1143_s23 = sphi %s1196_s23, %s1392_s23   ;;  %s1139_s22 = sphi %s1194_s22, %s1391_s22   ;;  %s1135_s21 = sphi %s1192_s21, %s1390_s21  }
   0x5   : > { %s31_s29 = sadd.s32 1, %s1151_s25  ;;  %s193_s30 = sadd.s32 1, %s1143_s23 }
   0x6   : > { %p33_p0 = scmp.ge.s32.totalorder %s31_s29, 7  ;;  %p203_p1 = scmp.ne.s32.totalorder %s1143_s23, %s1139_s22 }
   0x7   : > { %p204_p2 = scmp.eq.s32.totalorder %s835_s27, 6  ;;  %p209_p3 = scmp.ne.s32.totalorder %s1139_s22, %s1135_s21 }
   0x8   : > { %s1396_s29 = smov (%p33_p0, %s31_s29), 0  ;;  %p210_p5 = scmp.eq.s32.totalorder %s836_s28, 6 }
   0x9   : > { %p1232_p4 = por %p204_p2, %p203_p1  ;;  %s190_s8 = ssub.s32 %s1151_s25, %s1396_s29 }
   0xa   : > { %p839_p6 = scmp.ge.s32.totalorder %s1155_s26, 1  ;;  %p191_p7 = scmp.eq.s32.totalorder %s190_s8, 0 }
   0xb   : > { %p1239_p8 = por %p210_p5, %p209_p3  ;;  %p274_p9 = scmp.lt.s32.totalorder %s1155_s26, 8 }
   0xc   : > { %s1245_s10 = scalar_select %p191_p7, %s1143_s23, %s193_s30  }
   0xd   : > { %p275_p10 = pnand %p839_p6, %p274_p9 }
   0xe   : > { %p326_p11 = scmp.lt.s32.totalorder (!%p275_p10), %s1147_s24, 6  ;;  %s323_s27 = sand.u32 (!%p275_p10), 1, %s1139_s22  }
   0xf   : > { %278 = sbr.rel (%p275_p10) target bundleno = 433 (0x1b1), region = 44  ;;  %s840_s28 = sshll.u32 (!%p275_p10), %s323_s27, 5 }
  0x14   : > { %s1249_s11 = scalar_select %p326_p11, %s1147_s24, 6  ;;  %vm373_vm0 = vcmask 1043456   ;;  %v362_v5 = vld [vmem:[%s1381_s0] sm:$0xff]  ;;  %vm369_vm1 = vcmask 162816   ;;  %vm409_vm2 = vcmask 523264  }
  0x16   : > { %s1019_s12 = smul.u32 24, %s1249_s11  ;;  %s984_s13 = sshll.u32 %s1249_s11, 6 }
  0x17   : > { %s335_s19 = scalar_lea.vmem %s1383_s2, %s984_s13  ;;  %s844_s20 = sshll.u32 %s1249_s11, 1 }
  0x18   : > { %s330_s16 = scalar_lea.vmem %s1382_s1, %s1019_s12  ;;  %v405_v2 = vld [vmem:[%s335_s19 + $0x38] sm:$0xff]  ;;  %v404_v3 = vld [vmem:[%s335_s19 + $0x30] sm:$0xff]  ;;  %s1263_s30 = scalar_lea.vmem %s1384_s3, %s844_s20  ;;  %v403_v6 = vld [vmem:[%s335_s19 + $0x28] sm:$0xff] }
  0x19   : > { %v365_v0 = vld [vmem:[%s330_s16 + $0x10] sm:$0xf]  ;;  %v364_v1 = vld [vmem:[%s330_s16 + $0x8] sm:$0xff]  ;;  %v363_v4 = vld [vmem:[%s330_s16] sm:$0xff]  ;;  %421 = vmatpush.msra.mxu1 %v405_v2  ;;  %s985_s13 = sshll.u32 %s1249_s11, 8  ;;  %s847_s17 = sshll.u32 %s1249_s11, 2 }
  0x1a   : > { %848 = vmatpush.msk.msra.mxu0 %vm373_vm0, %v365_v0  ;;  %v402_v7 = vld [vmem:[%s335_s19 + $0x20] sm:$0xff]  ;;  %v401_v8 = vld [vmem:[%s335_s19 + $0x18] sm:$0xff]  ;;  %v400_v9 = vld [vmem:[%s335_s19 + $0x10] sm:$0xff]  ;;  %s1272_s16 = scalar_lea.vmem %s1385_s4, %s985_s13  ;;  %s353_s20 = scalar_lea.vmem %s1386_s5, %s847_s17 }
  0x1b   : > { %422 = vmatpush.msra.mxu1 %v404_v3  ;;  %v399_v10 = vld [vmem:[%s335_s19 + $0x8] sm:$0xff]  ;;  %v398_v11 = vld [vmem:[%s335_s19] sm:$0xff]  ;;  %v1016_v13 = vld [vmem:[%s1272_s16 + $0xec] sm:$0xf0]  ;;  %s325_s11 = scalar_lea.vmem [#allocation3], %s840_s28 }
  0x1c   : > { %391 = vmatpush.msra.mxu0 %v364_v1  ;;  %v965_v12 = vld [vmem:[%s1272_s16 + $0xe0] sm:$0xf]  ;;  %v1014_v14 = vld [vmem:[%s1272_s16 + $0xe4] sm:$0xf]  ;;  %v967_v16 = vld [vmem:[%s1272_s16 + $0xf0] sm:$0xf0] }
  0x1d   : > { %423 = vmatpush.msra.mxu1 %v403_v6  ;;  %v966_v15 = vor.u32 %v1016_v13, %v965_v12  ;;  %v973_v17 = vld [vmem:[%s1272_s16 + $0xe8] sm:$0xf]  ;;  %v1017_v18 = vld [vmem:[%s1272_s16 + $0xf4] sm:$0xf0]  ;;  %v970_v19 = vor.u32 %v1014_v14, %v967_v16  ;;  %v1015_v21 = vld [vmem:[%s1272_s16 + $0xec] sm:$0xf] }
  0x1e   : > { %392 = vmatpush.msra.mxu0 %v363_v4  ;;  %v974_v20 = vor.u32 %v1017_v18, %v973_v17  ;;  %v975_v22 = vld [vmem:[%s1272_s16 + $0xf8] sm:$0xf0]  ;;  %v949_v23 = vld [vmem:[%s1272_s16 + $0xc0] sm:$0xf]  ;;  %v1012_v25 = vld [vmem:[%s1272_s16 + $0xcc] sm:$0xf0] }
  0x1f   : > { %849 = vmatmul.msk.f32.vlgmr.msra.gmra.mxu0 %vm369_vm1, %v362_v5  ;;  %424 = vmatpush.msra.mxu1 %v402_v7  ;;  %v978_v24 = vor.u32 %v1015_v21, %v975_v22  ;;  %v1010_v26 = vld [vmem:[%s1272_s16 + $0xc4] sm:$0xf]  ;;  %v951_v27 = vld [vmem:[%s1272_s16 + $0xd0] sm:$0xf0]  ;;  %v950_v28 = vor.u32 %v1012_v25, %v949_v23  ;;  %v957_v30 = vld [vmem:[%s1272_s16 + $0xc8] sm:$0xf] }
  0x20   : > { %639 = vmatpush.bf16.msra.mxu2 %v966_v15  ;;  %652 = vmatpush.bf16.msra.mxu3 %v970_v19  ;;  %v954_v29 = vor.u32 %v1010_v26, %v951_v27  ;;  %v1013_v31 = vld [vmem:[%s1272_s16 + $0xd4] sm:$0xf0]  ;;  %v1011_v32 = vld [vmem:[%s1272_s16 + $0xcc] sm:$0xf]  ;;  %v959_v34 = vld [vmem:[%s1272_s16 + $0xd8] sm:$0xf0] }
  0x21   : > { %425 = vmatpush.msra.mxu1 %v401_v8  ;;  %665 = vmatpush.bf16.msrb.mxu0 %v974_v20  ;;  %v958_v33 = vor.u32 %v1013_v31, %v957_v30  ;;  %v933_v35 = vld [vmem:[%s1272_s16 + $0xa0] sm:$0xf]  ;;  %v1008_v36 = vld [vmem:[%s1272_s16 + $0xac] sm:$0xf0]  ;;  %v962_v37 = vor.u32 %v1011_v32, %v959_v34  ;;  %v1006_v38 = vld [vmem:[%s1272_s16 + $0xa4] sm:$0xf] }
  0x22   : > { %v935_v39 = vld [vmem:[%s1272_s16 + $0xb0] sm:$0xf0]  ;;  %v941_v40 = vld [vmem:[%s1272_s16 + $0xa8] sm:$0xf]  ;;  %v934_v41 = vor.u32 %v1008_v36, %v933_v35  ;;  %v1009_v42 = vld [vmem:[%s1272_s16 + $0xb4] sm:$0xf0] }
  0x23   : > { %426 = vmatpush.msra.mxu1 %v400_v9  ;;  %v1007_v43 = vld [vmem:[%s1272_s16 + $0xac] sm:$0xf]  ;;  %v943_v44 = vld [vmem:[%s1272_s16 + $0xb8] sm:$0xf0]  ;;  %v938_v45 = vor.u32 %v1006_v38, %v935_v39  ;;  %v942_v46 = vor.u32 %v1009_v42, %v941_v40  ;;  %v917_v47 = vld [vmem:[%s1272_s16 + $0x80] sm:$0xf] }
  0x24   : > { %640 = vmatpush.bf16.msra.mxu2 %v950_v28  ;;  %653 = vmatpush.bf16.msra.mxu3 %v954_v29  ;;  %v1004_v48 = vld [vmem:[%s1272_s16 + $0x8c] sm:$0xf0]  ;;  %v1002_v49 = vld [vmem:[%s1272_s16 + $0x84] sm:$0xf]  ;;  %v946_v50 = vor.u32 %v1007_v43, %v943_v44  ;;  %v919_v51 = vld [vmem:[%s1272_s16 + $0x90] sm:$0xf0] }
  0x25   : > { %427 = vmatpush.msra.mxu1 %v399_v10  ;;  %666 = vmatpush.bf16.msrb.mxu0 %v958_v33  ;;  %v925_v52 = vld [vmem:[%s1272_s16 + $0x88] sm:$0xf]  ;;  %v1005_v53 = vld [vmem:[%s1272_s16 + $0x94] sm:$0xf0]  ;;  %v1003_v54 = vld [vmem:[%s1272_s16 + $0x8c] sm:$0xf]  ;;  %v918_v56 = vor.u32 %v1004_v48, %v917_v47  ;;  %v922_v57 = vor.u32 %v1002_v49, %v919_v51 }
  0x26   : > { %v927_v55 = vld [vmem:[%s1272_s16 + $0x98] sm:$0xf0]  ;;  %v926_v58 = vor.u32 %v1005_v53, %v925_v52  ;;  %v901_v59 = vld [vmem:[%s1272_s16 + $0x60] sm:$0xf]  ;;  %v1000_v60 = vld [vmem:[%s1272_s16 + $0x6c] sm:$0xf0] }
  0x27   : > { %428 = vmatpush.msra.mxu1 %v398_v11  ;;  %v998_v61 = vld [vmem:[%s1272_s16 + $0x64] sm:$0xf]  ;;  %v930_v62 = vor.u32 %v1003_v54, %v927_v55  ;;  %v903_v63 = vld [vmem:[%s1272_s16 + $0x70] sm:$0xf0]  ;;  %v909_v0 = vld [vmem:[%s1272_s16 + $0x68] sm:$0xf]  ;;  %v902_v4 = vor.u32 %v1000_v60, %v901_v59 }
  0x28   : > { %641 = vmatpush.bf16.msra.mxu2 %v934_v41  ;;  %654 = vmatpush.bf16.msra.mxu3 %v938_v45  ;;  %v1001_v1 = vld [vmem:[%s1272_s16 + $0x74] sm:$0xf0]  ;;  %v999_v2 = vld [vmem:[%s1272_s16 + $0x6c] sm:$0xf]  ;;  %v911_v3 = vld [vmem:[%s1272_s16 + $0x78] sm:$0xf0]  ;;  %v906_v5 = vor.u32 %v998_v61, %v903_v63 }
  0x29   : > { %678 = vmatpush.bf16.msrb.mxu1 %v978_v24  ;;  %667 = vmatpush.bf16.msrb.mxu0 %v942_v46  ;;  %v910_v6 = vor.u32 %v1001_v1, %v909_v0  ;;  %v885_v7 = vld [vmem:[%s1272_s16 + $0x40] sm:$0xf]  ;;  %v996_v8 = vld [vmem:[%s1272_s16 + $0x4c] sm:$0xf0]  ;;  %v994_v9 = vld [vmem:[%s1272_s16 + $0x44] sm:$0xf]  ;;  %v914_v10 = vor.u32 %v999_v2, %v911_v3 }
  0x2a   : > { %v887_v11 = vld [vmem:[%s1272_s16 + $0x50] sm:$0xf0]  ;;  %v893_v12 = vld [vmem:[%s1272_s16 + $0x48] sm:$0xf]  ;;  %v997_v13 = vld [vmem:[%s1272_s16 + $0x54] sm:$0xf0]  ;;  %v886_v16 = vor.u32 %v996_v8, %v885_v7 }
  0x2b   : > { %v995_v14 = vld [vmem:[%s1272_s16 + $0x4c] sm:$0xf]  ;;  %v895_v15 = vld [vmem:[%s1272_s16 + $0x58] sm:$0xf0]  ;;  %v890_v17 = vor.u32 %v994_v9, %v887_v11  ;;  %v894_v18 = vor.u32 %v997_v13, %v893_v12  ;;  %v1075_v20 = vld [vmem:[%s1263_s30] ss:$0 sm:$0xff] }
  0x2c   : > { %642 = vmatpush.bf16.msra.mxu2 %v918_v56  ;;  %655 = vmatpush.bf16.msra.mxu3 %v922_v57  ;;  %v898_v19 = vor.u32 %v995_v14, %v895_v15  ;;  %v869_v24 = vld [vmem:[%s1272_s16 + $0x20] sm:$0xf]  ;;  %v992_v25 = vld [vmem:[%s1272_s16 + $0x2c] sm:$0xf0]  ;;  %v990_v26 = vld [vmem:[%s1272_s16 + $0x24] sm:$0xf] }
  0x2d   : > { %679 = vmatpush.bf16.msrb.mxu1 %v962_v37  ;;  %668 = vmatpush.bf16.msrb.mxu0 %v926_v58  ;;  %v870_v27 = vor.u32 %v992_v25, %v869_v24  ;;  %v871_v28 = vld [vmem:[%s1272_s16 + $0x30] sm:$0xf0]  ;;  %v877_v29 = vld [vmem:[%s1272_s16 + $0x28] sm:$0xf]  ;;  %v993_v30 = vld [vmem:[%s1272_s16 + $0x34] sm:$0xf0] }
  0x2e   : > { %v874_v31 = vor.u32 %v990_v26, %v871_v28  ;;  %v878_v32 = vor.u32 %v993_v30, %v877_v29  ;;  %v991_v33 = vld [vmem:[%s1272_s16 + $0x2c] sm:$0xf]  ;;  %v879_v34 = vld [vmem:[%s1272_s16 + $0x38] sm:$0xf0]  ;;  %v853_v36 = vld [vmem:[%s1272_s16] sm:$0xf] }
  0x2f   : > { %v882_v35 = vor.u32 %v991_v33, %v879_v34  ;;  %v988_v37 = vld [vmem:[%s1272_s16 + $0xc] sm:$0xf0]  ;;  %v986_v38 = vld [vmem:[%s1272_s16 + $0x4] sm:$0xf]  ;;  %v855_v40 = vld [vmem:[%s1272_s16 + $0x10] sm:$0xf0] }
  0x30   : > { %643 = vmatpush.bf16.msra.mxu2 %v902_v4  ;;  %656 = vmatpush.bf16.msra.mxu3 %v906_v5  ;;  %v854_v39 = vor.u32 %v988_v37, %v853_v36  ;;  %v861_v41 = vld [vmem:[%s1272_s16 + $0x8] sm:$0xf]  ;;  %v989_v42 = vld [vmem:[%s1272_s16 + $0x14] sm:$0xf0]  ;;  %v858_v43 = vor.u32 %v986_v38, %v855_v40  ;;  %v987_v45 = vld [vmem:[%s1272_s16 + $0xc] sm:$0xf] }
  0x31   : > { %680 = vmatpush.bf16.msrb.mxu1 %v946_v50  ;;  %669 = vmatpush.bf16.msrb.mxu0 %v910_v6  ;;  %v862_v44 = vor.u32 %v989_v42, %v861_v41  ;;  %v863_v46 = vld [vmem:[%s1272_s16 + $0x18] sm:$0xf0]  ;;  %v1076_v48 = vld [vmem:[%s1263_s30 + $0x1] ss:$0 sm:$0xff]  ;;  %s1018_s30 = sshll.u32 %s1147_s24, 5  ;;  %s710_s14 = sshll.u32 %s325_s11, 4  ;;  %s711_s14 = int_to_ptr.vmem [resolvable:$true] %s710_s14 }
  0x32   : > { %v866_v47 = vor.u32 %v987_v45, %v863_v46  ;;  %v435_v53 = vld [vmem:[%s353_s20] sm:$0xf]  ;;  %s708_s13 = scalar_lea.hbm %s1387_s6, %s1018_s30  ;;  %s696_s24 = scalar_lea.sflag [#allocation4], %s323_s27 }
  0x33   : > { %v473_v54 = vperm.slane %v435_v53, 2  ;;  %v474_v55 = vperm.slane %v435_v53, 3  ;;  %v471_v60 = vperm.slane %v435_v53, 0  ;;  %v472_v61 = vperm.slane %v435_v53, 1  ;;  %s712_s15 = sshll.u32 %s708_s13, 4  ;;  %s1097_s20 = scalar_lea.hbm %s1387_s6, 224  ;;  %s713_s15 = int_to_ptr.hbm [resolvable:$true] %s712_s15 }
  0x34   : > { %644 = vmatpush.bf16.msra.mxu2 %v886_v16  ;;  %657 = vmatpush.bf16.msra.mxu3 %v890_v17  ;;  %s1091_s16 = sshra.s32 %s713_s15, 4  ;;  %s1092_s16 = int_to_ptr.hbm [resolvable:$true] %s1091_s16 }
  0x35   : > { %681 = vmatpush.bf16.msrb.mxu1 %v930_v62  ;;  %670 = vmatpush.bf16.msrb.mxu0 %v894_v18  ;;  %s1093_s17 = scalar_lea.hbm %s1092_s16, 32  ;;  %p1098_p1 = scmp.lt.s32.totalorder %s1092_s16, %s1387_s6 }
  0x36   : > { %p1094_p12 = scmp.ne.s32.totalorder %s1092_s16, %s1093_s17  ;;  %p1099_p2 = scmp.lt.s32.totalorder %s1097_s20, %s1093_s17 }
  0x38   : > { %645 = vmatpush.bf16.msra.mxu2 %v870_v27  ;;  %658 = vmatpush.bf16.msra.mxu3 %v874_v31  ;;  %p1095_p13 = pnand %p1094_p12, %p1232_p4  ;;  %p1100_p3 = por %p1099_p2, %p1098_p1 }
  0x39   : > { %682 = vmatpush.bf16.msrb.mxu1 %v914_v10  ;;  %671 = vmatpush.bf16.msrb.mxu0 %v878_v32 }
  0x3a   : > { %p1096_p0 = pneg %p1095_p13 }
  0x3c   : > { %646 = vmatpush.bf16.msra.mxu2 %v854_v39  ;;  %659 = vmatpush.bf16.msra.mxu3 %v858_v43  ;;  %p1101_p5 = pnand %p1100_p3, %p1096_p0 }
  0x3d   : > { %683 = vmatpush.bf16.msrb.mxu1 %v898_v19  ;;  %672 = vmatpush.bf16.msrb.mxu0 %v862_v44 }
  0x41   : > { %684 = vmatpush.bf16.msrb.mxu1 %v882_v35 }
  0x45   : > { %685 = vmatpush.bf16.msrb.mxu1 %v866_v47 }
  0x9c   : > { %v394_v21 = vpop.f32.mrf.mxu0 }
  0x9d   : > { %v395_v22 = vadd.f32 %v1075_v20, %v394_v21 }
  0x9f   : > { %v397_v23 = vmax.f32 %v395_v22, 0.0 }
  0xa1   : > { %850 = vmatmul.msk.f32.vlgmr.msra.gmra.mxu1 %vm409_vm2, %v397_v23 }
 0x11e   : > { %v430_v49 = vpop.f32.mrf.mxu1 }
 0x11f   : > { %v431_v50 = vadd.f32 %v1076_v48, %v430_v49 }
 0x121   : > { %v433_v51 = vmax.f32 %v431_v50, 0.0 }
 0x123   : > { %v437_v52 = vpack.c.bf16 %v433_v51, %v433_v51 }
 0x125   : > { %647 = vmatmul.bf16.vlgmr.msra.gmra.mxu2 %v437_v52  ;;  %660 = vmatmul.bf16.vlgmr.msra.gmra.mxu3 %v437_v52 }
 0x126   : > { %673 = vmatmul.bf16.vlgmr.msrb.gmra.mxu0 %v437_v52  ;;  %686 = vmatmul.bf16.vlgmr.msrb.gmra.mxu1 %v437_v52 }
 0x1a3   : > { %v674_v56 = vpop.f32.mrf.mxu0  ;;  %v687_v57 = vpop.f32.mrf.mxu1 }
 0x1a4   : > { %v675_v58 = vadd.f32 %v674_v56, %v473_v54  ;;  %v688_v59 = vadd.f32 %v687_v57, %v474_v55 }
 0x1a6   : > { %693 = vst [vmem:[%s325_s11 + $0x10] sm:$0xff] %v675_v58 }
 0x1a7   : > { %694 = vst [vmem:[%s325_s11 + $0x18] sm:$0xff] %v688_v59 }
 0x1a8   : > { %v648_v62 = vpop.f32.mrf.mxu2  ;;  %v661_v63 = vpop.f32.mrf.mxu3 }
 0x1a9   : > { %v649_v0 = vadd.f32 %v648_v62, %v471_v60  ;;  %v662_v1 = vadd.f32 %v661_v63, %v472_v61 }
 0x1ab   : > { %691 = vst [vmem:[%s325_s11] sm:$0xff] %v649_v0  ;;  %v676_v2 = vpop.f32.mrf.mxu0  ;;  %v689_v3 = vpop.f32.mrf.mxu1 }
 0x1ac   : > { %692 = vst [vmem:[%s325_s11 + $0x8] sm:$0xff] %v662_v1 }
 0x1ad   : > { %1104 = shalt.err (!%p1101_p5)
}
 0x1ae   : > { %1020 = dma.vmem_to_hbm [thread:$0]  (%p1232_p4), %s711_s14, 512, %s713_s15, %s696_s24  }
 0x1b0   : > { %v650_v4 = vpop.f32.mrf.mxu2  ;;  %v663_v5 = vpop.f32.mrf.mxu3 }
 0x1b1 PF: > { %p1026_p6 = scmp.ge.s32.totalorder %s1155_s26, 2  ;;  %s724_s27 = sand.u32 1, %s1135_s21  }
 0x1b2   : > { %s725_s8 = scalar_lea.sflag [#allocation4], %s724_s27 }
 0x1b3   : > { %p1023_p7 = pnand %p1026_p6, %p1239_p8 }
 0x1b5   : > { %p1024_p9 = pneg %p1023_p7 }
 0x1b7   : > { %1130 = dma.done.wait (%p1024_p9), %s725_s8, 512  }
 0x1b8   : > { %1132 = vsyncadd (%p1024_p9), %s725_s8, 4294966784  ;;  %s19_s26 = sadd.s32 1, %s1155_s26   ;;  %s1390_s21 = smov %s1139_s22 }
 0x1b9   : > { %p16_p10 = scmp.ge.s32.totalorder %s19_s26, 9   ;;  %s1391_s22 = smov %s1143_s23 }
 0x1ba   : > { %s1392_s23 = smov %s1245_s10  ;;  %s1393_s24 = smov %s1151_s25 }
 0x1bb   : > { %s1394_s25 = smov %s1396_s29  ;;  %18 = sbr.rel (!%p16_p10) target bundleno = 4 (0x4), region = 95 }
 0x1c0   :  { %731 = vsyncpa [#allocation4], 1 }
 0x1c1   :  { %733 = vsyncpa [#allocation4 + $0x1], 1 }

</bundles_post_ra>
